<compile_context>
chip_gen: v7x
topology: tpu7x:2x2x1
jax: 0.10.0
libtpu: 0.0.40
codegen_flags: <defaults>
</compile_context>

<pallas_src>
import jax
import jax.numpy as jnp
from jax.experimental import pallas as pl
from jax.experimental.pallas import tpu as pltpu


# --------------------------------------------------------------------------
# Layout helpers
# --------------------------------------------------------------------------
def _round_up(n, m):
    return -(-n // m) * m


def _layer_layout(latent_dim, feature_dim, hidden_dim):
    """Per-layer (din, dout) plus 128-lane-aligned packing metadata."""
    raw = [
        (feature_dim, hidden_dim),            # encoder
        (hidden_dim, hidden_dim // 2),
        (hidden_dim // 2, hidden_dim // 4),
        (hidden_dim // 4, 2 * latent_dim),    # -> mean | logvar (special)
        (latent_dim, hidden_dim // 4),        # decoder
        (hidden_dim // 4, hidden_dim // 2),
        (hidden_dim // 2, hidden_dim),
        (hidden_dim, feature_dim),
    ]
    lpad = _round_up(latent_dim, 128)
    layers, off = [], 0
    for i, (din, dout) in enumerate(raw):
        din_pad = _round_up(din, 128)
        # Encoder head: mean and logvar each get their own 128-aligned block.
        dout_pad = 2 * lpad if i == 3 else _round_up(dout, 128)
        layers.append(dict(din=din, dout=dout, din_pad=din_pad,
                           dout_pad=dout_pad, off=off))
        off += dout_pad
    k_max_pad = max(l["din_pad"] for l in layers)
    return layers, k_max_pad, off, lpad


def make_packed_params(key, latent_dim, feature_dim, hidden_dim):
    """PyTorch-style init U(-1/sqrt(fan_in), 1/sqrt(fan_in)).

    Weights are stored pre-transposed [in, out], cast to bf16 and packed into
    one lane-aligned slab; biases go into one f32 row with identical lane
    offsets.  All padding rows / lanes are exactly zero (required so padded
    activation lanes stay zero through ReLU)."""
    layers, k_max_pad, total_lanes, lpad = _layer_layout(
        latent_dim, feature_dim, hidden_dim)

    w_slab = jnp.zeros((k_max_pad, total_lanes), jnp.bfloat16)
    b_slab = jnp.zeros((1, total_lanes), jnp.float32)
    w_list, b_list = [], []

    for li, L in enumerate(layers):
        din, dout, off = L["din"], L["dout"], L["off"]
        key, wk, bk = jax.random.split(key, 3)
        bound = 1.0 / float(din) ** 0.5
        w = jax.random.uniform(wk, (din, dout), jnp.float32, -bound, bound)
        b = jax.random.uniform(bk, (1, dout), jnp.float32, -bound, bound)
        w_bf = w.astype(jnp.bfloat16)
        if li == 3:
            # mean weights -> lanes [off, off+latent), logvar -> [off+lpad, ...)
            w_slab = w_slab.at[:din, off:off + latent_dim].set(
                w_bf[:, :latent_dim])
            w_slab = w_slab.at[:din, off + lpad:off + lpad + latent_dim].set(
                w_bf[:, latent_dim:])
            b_slab = b_slab.at[:, off:off + latent_dim].set(b[:, :latent_dim])
            b_slab = b_slab.at[:, off + lpad:off + lpad + latent_dim].set(
                b[:, latent_dim:])
        else:
            w_slab = w_slab.at[:din, off:off + dout].set(w_bf)
            b_slab = b_slab.at[:, off:off + dout].set(b)
        w_list.append(w_bf)
        b_list.append(b)

    return w_slab, b_slab, layers, w_list, b_list


# --------------------------------------------------------------------------
# Kernel
# --------------------------------------------------------------------------
def _make_kernel(layers, fpad, lpad):
    def kernel(xin_ref, w_ref, b_ref, out_ref):
        def affine(h, li, relu):
            L = layers[li]
            off, dout_pad, din_pad = L["off"], L["dout_pad"], L["din_pad"]
            # Tile-aligned static views (lane offsets & widths are x128,
            # row count is x128): clean full-tile loads, zero relayout.
            w = w_ref[0:din_pad, off:off + dout_pad]        # bf16
            b = b_ref[0:1, off:off + dout_pad]              # f32
            y = jnp.dot(h.astype(jnp.bfloat16), w,
                        preferred_element_type=jnp.float32) + b
            return jnp.maximum(y, 0.0) if relu else y

        # ---- encoder: Linear+ReLU x3, Linear -> [B, 2*lpad] ----
        h = xin_ref[:, 0:fpad]                              # x, zero-padded
        for li in range(4):
            h = affine(h, li, relu=(li < 3))

        mean_blk = h[:, 0:lpad]                             # aligned views
        logvar_blk = h[:, lpad:2 * lpad]

        # Early lane-aligned stores: free vregs before the decoder matmuls.
        out_ref[:, fpad:fpad + lpad] = mean_blk
        out_ref[:, fpad + lpad:fpad + 2 * lpad] = logvar_blk

        # ---- reparameterize: z = eps * exp(0.5*logvar) + mean ----
        eps_blk = xin_ref[:, fpad:fpad + lpad]              # aligned view
        z = eps_blk * jnp.exp(logvar_blk * 0.5) + mean_blk

        # ---- decoder: Linear+ReLU x3, Linear -> [B, fpad] ----
        g = z
        for li in range(4, 8):
            g = affine(g, li, relu=(li < 7))

        out_ref[:, 0:fpad] = g                              # recon block

    return kernel


# --------------------------------------------------------------------------
# Wrapper
# --------------------------------------------------------------------------
def deep_vae_forward(x, eps, w_slab, b_slab, layers, latent_dim, feature_dim):
    batch = x.shape[0]
    fpad = _round_up(feature_dim, 128)
    lpad = _round_up(latent_dim, 128)
    k_max_pad, total_lanes = w_slab.shape
    in_cols = fpad + lpad                 # x | eps, both 128-aligned
    out_cols = fpad + 2 * lpad            # recon | mean | logvar, all aligned

    # Batch tiling:
    #  * batch < 16  -> single tile (splitting a tiny batch only adds overhead)
    #  * batch >= 16 -> at least 2 parallel grid steps (v7x has 2 TensorCores),
    #                   tiles capped at 1024 rows (per-step overhead amortized,
    #                   per-tile VMEM footprint stays small).
    if batch < 16:
        b_tile = batch
    else:
        b_tile = min(1024, _round_up(-(-batch // 2), 8))
    batch_p = _round_up(batch, b_tile)

    # Fused, zero-padded input slab: x in lanes [0, feature), eps at lane fpad.
    xin = jnp.zeros((batch_p, in_cols), jnp.float32)
    xin = xin.at[:batch, :feature_dim].set(x)
    xin = xin.at[:batch, fpad:fpad + latent_dim].set(eps)

    kernel = _make_kernel(layers, fpad, lpad)

    # VMEM budget: double-buffered input/output tiles + the (constant-index)
    # weight/bias slabs.  Raised above the 32 MiB scoped default only if
    # needed; capped at v7x's 64 MiB physical VMEM.
    per_buf = (b_tile * in_cols * 4 + b_tile * out_cols * 4
               + k_max_pad * total_lanes * 2 + total_lanes * 4)
    vmem_limit = int(min(64 * 1024 * 1024,
                         max(32 * 1024 * 1024, 2 * per_buf + (2 << 20))))

    flops = 2 * batch_p * sum(l["din"] * l["dout"] for l in layers)
    bytes_accessed = (batch_p * in_cols * 4 + k_max_pad * total_lanes * 2
                      + total_lanes * 4 + batch_p * out_cols * 4)

    fused = pl.pallas_call(
        kernel,
        out_shape=jax.ShapeDtypeStruct((batch_p, out_cols), jnp.float32),
        grid=(batch_p // b_tile,),
        in_specs=[
            pl.BlockSpec((b_tile, in_cols), lambda i: (i, 0)),     # x|eps tile
            pl.BlockSpec((k_max_pad, total_lanes), lambda i: (0, 0)),  # weights
            pl.BlockSpec((1, total_lanes), lambda i: (0, 0)),          # biases
        ],
        out_specs=pl.BlockSpec((b_tile, out_cols), lambda i: (i, 0)),
        compiler_params=pltpu.CompilerParams(
            dimension_semantics=("parallel",),
            vmem_limit_bytes=vmem_limit),
        cost_estimate=pl.CostEstimate(
            flops=flops,
            transcendentals=batch_p * lpad,
            bytes_accessed=bytes_accessed),
    )(xin, w_slab, b_slab)

    recon = fused[:batch, :feature_dim]
    mean = fused[:batch, fpad:fpad + latent_dim]
    logvar = fused[:batch, fpad + lpad:fpad + lpad + latent_dim]
    return recon, mean, logvar


# --------------------------------------------------------------------------
# Pure-JAX reference (same bf16 weights / f32 accumulation as the kernel)
# --------------------------------------------------------------------------
def ref_forward(x, eps, w_list, b_list, latent_dim):
    def affine(h, li, relu):
        y = jnp.dot(h.astype(jnp.bfloat16), w_list[li],
                    preferred_element_type=jnp.float32) + b_list[li]
        return jnp.maximum(y, 0.0) if relu else y

    h = x
    for li in range(4):
        h = affine(h, li, li < 3)
    mean, logvar = h[:, :latent_dim], h[:, latent_dim:]
    z = eps * jnp.exp(0.5 * logvar) + mean
    g = z
    for li in range(4, 8):
        g = affine(g, li, li < 7)
    return g, mean, logvar


if __name__ == "__main__":
    latent_dim = 8
    feature_dim = 32
    hidden_dim = 32
    batch = 8

    root = jax.random.PRNGKey(0)
    k_params, k_x, k_eps = jax.random.split(root, 3)

    w_slab, b_slab, layers, w_list, b_list = make_packed_params(
        k_params, latent_dim, feature_dim, hidden_dim)

    x = jax.random.normal(k_x, (batch, feature_dim), jnp.float32)
    # torch.randn_like(mean) equivalent, drawn host-side for determinism.
    eps = jax.random.normal(k_eps, (batch, latent_dim), jnp.float32)

    recon, mean, logvar = deep_vae_forward(
        x, eps, w_slab, b_slab, layers, latent_dim, feature_dim)
    jax.block_until_ready((recon, mean, logvar))

    r_ref, m_ref, lv_ref = ref_forward(x, eps, w_list, b_list, latent_dim)
    assert jnp.allclose(recon, r_ref, atol=2e-2, rtol=1e-2), "recon mismatch"
    assert jnp.allclose(mean, m_ref, atol=2e-2, rtol=1e-2), "mean mismatch"
    assert jnp.allclose(logvar, lv_ref, atol=2e-2, rtol=1e-2), "logvar mismatch"

    print("KERNEL_OK")
</pallas_src>

<mosaic_0001>
module attributes {stable_mosaic.version = 11 : i64} {
  func.func @kernel(%arg0: i32, %arg1: memref<8x256xf32, #tpu.memory_space<vmem>>, %arg2: memref<128x1152xbf16, #tpu.memory_space<vmem>>, %arg3: memref<1x1152xf32, #tpu.memory_space<vmem>>, %arg4: memref<8x384xf32, #tpu.memory_space<vmem>>) attributes {dimension_semantics = [#tpu.dimension_semantics<parallel>], iteration_bounds = array<i64: 1>, scalar_prefetch = 0 : i64, scratch_operands = 0 : i64, tpu.core_type = #tpu.core_type<tc>, window_params = [{transform_indices = @transform_0, window_bounds = array<i64: 8, 256>}, {pipeline_mode = #tpu.pipeline_mode<synchronous>, transform_indices = @transform_1, window_bounds = array<i64: 128, 1152>}, {pipeline_mode = #tpu.pipeline_mode<synchronous>, transform_indices = @transform_2, window_bounds = array<i64: 1, 1152>}, {transform_indices = @transform_3, window_bounds = array<i64: 8, 384>}]} {
    %c0 = arith.constant 0 : index
    %c0_0 = arith.constant 0 : index
    %0 = vector.load %arg1[%c0, %c0_0] : memref<8x256xf32, #tpu.memory_space<vmem>>, vector<8x128xf32>
    %c0_1 = arith.constant 0 : index
    %c0_2 = arith.constant 0 : index
    %1 = vector.load %arg2[%c0_1, %c0_2] : memref<128x1152xbf16, #tpu.memory_space<vmem>>, vector<128x128xbf16>
    %c0_3 = arith.constant 0 : index
    %c0_4 = arith.constant 0 : index
    %2 = vector.load %arg3[%c0_3, %c0_4] : memref<1x1152xf32, #tpu.memory_space<vmem>>, vector<1x128xf32>
    %3 = arith.truncf %0 : vector<8x128xf32> to vector<8x128xbf16>
    %cst = arith.constant dense<0.000000e+00> : vector<8x128xf32>
    %4 = tpu.matmul %3, %1, %cst {dimension_numbers = #tpu.dot_dimension_numbers<[1], [0], [0], [1], [0, 0, 1, 1], [], []>} : vector<8x128xbf16>, vector<128x128xbf16>, vector<8x128xf32> -> vector<8x128xf32>
    %5 = vector.broadcast %2 : vector<1x128xf32> to vector<8x128xf32>
    %6 = arith.addf %4, %5 : vector<8x128xf32>
    %cst_5 = arith.constant 0.000000e+00 : f32
    %7 = vector.broadcast %cst_5 : f32 to vector<8x128xf32>
    %8 = arith.maximumf %6, %7 : vector<8x128xf32>
    %c0_6 = arith.constant 0 : index
    %c128 = arith.constant 128 : index
    %9 = vector.load %arg2[%c0_6, %c128] : memref<128x1152xbf16, #tpu.memory_space<vmem>>, vector<128x128xbf16>
    %c0_7 = arith.constant 0 : index
    %c128_8 = arith.constant 128 : index
    %10 = vector.load %arg3[%c0_7, %c128_8] : memref<1x1152xf32, #tpu.memory_space<vmem>>, vector<1x128xf32>
    %11 = arith.truncf %8 : vector<8x128xf32> to vector<8x128xbf16>
    %cst_9 = arith.constant dense<0.000000e+00> : vector<8x128xf32>
    %12 = tpu.matmul %11, %9, %cst_9 {dimension_numbers = #tpu.dot_dimension_numbers<[1], [0], [0], [1], [0, 0, 1, 1], [], []>} : vector<8x128xbf16>, vector<128x128xbf16>, vector<8x128xf32> -> vector<8x128xf32>
    %13 = vector.broadcast %10 : vector<1x128xf32> to vector<8x128xf32>
    %14 = arith.addf %12, %13 : vector<8x128xf32>
    %cst_10 = arith.constant 0.000000e+00 : f32
    %15 = vector.broadcast %cst_10 : f32 to vector<8x128xf32>
    %16 = arith.maximumf %14, %15 : vector<8x128xf32>
    %c0_11 = arith.constant 0 : index
    %c256 = arith.constant 256 : index
    %17 = vector.load %arg2[%c0_11, %c256] : memref<128x1152xbf16, #tpu.memory_space<vmem>>, vector<128x128xbf16>
    %c0_12 = arith.constant 0 : index
    %c256_13 = arith.constant 256 : index
    %18 = vector.load %arg3[%c0_12, %c256_13] : memref<1x1152xf32, #tpu.memory_space<vmem>>, vector<1x128xf32>
    %19 = arith.truncf %16 : vector<8x128xf32> to vector<8x128xbf16>
    %cst_14 = arith.constant dense<0.000000e+00> : vector<8x128xf32>
    %20 = tpu.matmul %19, %17, %cst_14 {dimension_numbers = #tpu.dot_dimension_numbers<[1], [0], [0], [1], [0, 0, 1, 1], [], []>} : vector<8x128xbf16>, vector<128x128xbf16>, vector<8x128xf32> -> vector<8x128xf32>
    %21 = vector.broadcast %18 : vector<1x128xf32> to vector<8x128xf32>
    %22 = arith.addf %20, %21 : vector<8x128xf32>
    %cst_15 = arith.constant 0.000000e+00 : f32
    %23 = vector.broadcast %cst_15 : f32 to vector<8x128xf32>
    %24 = arith.maximumf %22, %23 : vector<8x128xf32>
    %c0_16 = arith.constant 0 : index
    %c384 = arith.constant 384 : index
    %25 = vector.load %arg2[%c0_16, %c384] : memref<128x1152xbf16, #tpu.memory_space<vmem>>, vector<128x256xbf16>
    %c0_17 = arith.constant 0 : index
    %c384_18 = arith.constant 384 : index
    %26 = vector.load %arg3[%c0_17, %c384_18] : memref<1x1152xf32, #tpu.memory_space<vmem>>, vector<1x256xf32>
    %27 = arith.truncf %24 : vector<8x128xf32> to vector<8x128xbf16>
    %cst_19 = arith.constant dense<0.000000e+00> : vector<8x256xf32>
    %28 = tpu.matmul %27, %25, %cst_19 {dimension_numbers = #tpu.dot_dimension_numbers<[1], [0], [0], [1], [0, 0, 1, 1], [], []>} : vector<8x128xbf16>, vector<128x256xbf16>, vector<8x256xf32> -> vector<8x256xf32>
    %29 = vector.broadcast %26 : vector<1x256xf32> to vector<8x256xf32>
    %30 = arith.addf %28, %29 : vector<8x256xf32>
    %31 = vector.extract_strided_slice %30 {offsets = [0, 0], sizes = [8, 128], strides = [1, 1]} : vector<8x256xf32> to vector<8x128xf32>
    %32 = vector.extract_strided_slice %30 {offsets = [0, 128], sizes = [8, 128], strides = [1, 1]} : vector<8x256xf32> to vector<8x128xf32>
    %c0_20 = arith.constant 0 : index
    %c128_21 = arith.constant 128 : index
    %33 = vector.load %arg4[%c0_20, %c128_21] : memref<8x384xf32, #tpu.memory_space<vmem>>, vector<8x128xf32>
    tpu.vector_store %arg4[%c0_20, %c128_21], %31 {strides = array<i32>} : memref<8x384xf32, #tpu.memory_space<vmem>>, vector<8x128xf32>,
    %c0_22 = arith.constant 0 : index
    %c256_23 = arith.constant 256 : index
    %34 = vector.load %arg4[%c0_22, %c256_23] : memref<8x384xf32, #tpu.memory_space<vmem>>, vector<8x128xf32>
    tpu.vector_store %arg4[%c0_22, %c256_23], %32 {strides = array<i32>} : memref<8x384xf32, #tpu.memory_space<vmem>>, vector<8x128xf32>,
    %c0_24 = arith.constant 0 : index
    %c128_25 = arith.constant 128 : index
    %35 = vector.load %arg1[%c0_24, %c128_25] : memref<8x256xf32, #tpu.memory_space<vmem>>, vector<8x128xf32>
    %cst_26 = arith.constant 5.000000e-01 : f32
    %36 = vector.broadcast %cst_26 : f32 to vector<8x128xf32>
    %37 = arith.mulf %32, %36 : vector<8x128xf32>
    %38 = math.exp %37 : vector<8x128xf32>
    %39 = arith.mulf %35, %38 : vector<8x128xf32>
    %40 = arith.addf %39, %31 : vector<8x128xf32>
    %c0_27 = arith.constant 0 : index
    %c640 = arith.constant 640 : index
    %41 = vector.load %arg2[%c0_27, %c640] : memref<128x1152xbf16, #tpu.memory_space<vmem>>, vector<128x128xbf16>
    %c0_28 = arith.constant 0 : index
    %c640_29 = arith.constant 640 : index
    %42 = vector.load %arg3[%c0_28, %c640_29] : memref<1x1152xf32, #tpu.memory_space<vmem>>, vector<1x128xf32>
    %43 = arith.truncf %40 : vector<8x128xf32> to vector<8x128xbf16>
    %cst_30 = arith.constant dense<0.000000e+00> : vector<8x128xf32>
    %44 = tpu.matmul %43, %41, %cst_30 {dimension_numbers = #tpu.dot_dimension_numbers<[1], [0], [0], [1], [0, 0, 1, 1], [], []>} : vector<8x128xbf16>, vector<128x128xbf16>, vector<8x128xf32> -> vector<8x128xf32>
    %45 = vector.broadcast %42 : vector<1x128xf32> to vector<8x128xf32>
    %46 = arith.addf %44, %45 : vector<8x128xf32>
    %cst_31 = arith.constant 0.000000e+00 : f32
    %47 = vector.broadcast %cst_31 : f32 to vector<8x128xf32>
    %48 = arith.maximumf %46, %47 : vector<8x128xf32>
    %c0_32 = arith.constant 0 : index
    %c768 = arith.constant 768 : index
    %49 = vector.load %arg2[%c0_32, %c768] : memref<128x1152xbf16, #tpu.memory_space<vmem>>, vector<128x128xbf16>
    %c0_33 = arith.constant 0 : index
    %c768_34 = arith.constant 768 : index
    %50 = vector.load %arg3[%c0_33, %c768_34] : memref<1x1152xf32, #tpu.memory_space<vmem>>, vector<1x128xf32>
    %51 = arith.truncf %48 : vector<8x128xf32> to vector<8x128xbf16>
    %cst_35 = arith.constant dense<0.000000e+00> : vector<8x128xf32>
    %52 = tpu.matmul %51, %49, %cst_35 {dimension_numbers = #tpu.dot_dimension_numbers<[1], [0], [0], [1], [0, 0, 1, 1], [], []>} : vector<8x128xbf16>, vector<128x128xbf16>, vector<8x128xf32> -> vector<8x128xf32>
    %53 = vector.broadcast %50 : vector<1x128xf32> to vector<8x128xf32>
    %54 = arith.addf %52, %53 : vector<8x128xf32>
    %cst_36 = arith.constant 0.000000e+00 : f32
    %55 = vector.broadcast %cst_36 : f32 to vector<8x128xf32>
    %56 = arith.maximumf %54, %55 : vector<8x128xf32>
    %c0_37 = arith.constant 0 : index
    %c896 = arith.constant 896 : index
    %57 = vector.load %arg2[%c0_37, %c896] : memref<128x1152xbf16, #tpu.memory_space<vmem>>, vector<128x128xbf16>
    %c0_38 = arith.constant 0 : index
    %c896_39 = arith.constant 896 : index
    %58 = vector.load %arg3[%c0_38, %c896_39] : memref<1x1152xf32, #tpu.memory_space<vmem>>, vector<1x128xf32>
    %59 = arith.truncf %56 : vector<8x128xf32> to vector<8x128xbf16>
    %cst_40 = arith.constant dense<0.000000e+00> : vector<8x128xf32>
    %60 = tpu.matmul %59, %57, %cst_40 {dimension_numbers = #tpu.dot_dimension_numbers<[1], [0], [0], [1], [0, 0, 1, 1], [], []>} : vector<8x128xbf16>, vector<128x128xbf16>, vector<8x128xf32> -> vector<8x128xf32>
    %61 = vector.broadcast %58 : vector<1x128xf32> to vector<8x128xf32>
    %62 = arith.addf %60, %61 : vector<8x128xf32>
    %cst_41 = arith.constant 0.000000e+00 : f32
    %63 = vector.broadcast %cst_41 : f32 to vector<8x128xf32>
    %64 = arith.maximumf %62, %63 : vector<8x128xf32>
    %c0_42 = arith.constant 0 : index
    %c1024 = arith.constant 1024 : index
    %65 = vector.load %arg2[%c0_42, %c1024] : memref<128x1152xbf16, #tpu.memory_space<vmem>>, vector<128x128xbf16>
    %c0_43 = arith.constant 0 : index
    %c1024_44 = arith.constant 1024 : index
    %66 = vector.load %arg3[%c0_43, %c1024_44] : memref<1x1152xf32, #tpu.memory_space<vmem>>, vector<1x128xf32>
    %67 = arith.truncf %64 : vector<8x128xf32> to vector<8x128xbf16>
    %cst_45 = arith.constant dense<0.000000e+00> : vector<8x128xf32>
    %68 = tpu.matmul %67, %65, %cst_45 {dimension_numbers = #tpu.dot_dimension_numbers<[1], [0], [0], [1], [0, 0, 1, 1], [], []>} : vector<8x128xbf16>, vector<128x128xbf16>, vector<8x128xf32> -> vector<8x128xf32>
    %69 = vector.broadcast %66 : vector<1x128xf32> to vector<8x128xf32>
    %70 = arith.addf %68, %69 : vector<8x128xf32>
    %c0_46 = arith.constant 0 : index
    %c0_47 = arith.constant 0 : index
    %71 = vector.load %arg4[%c0_46, %c0_47] : memref<8x384xf32, #tpu.memory_space<vmem>>, vector<8x128xf32>
    tpu.vector_store %arg4[%c0_46, %c0_47], %70 {strides = array<i32>} : memref<8x384xf32, #tpu.memory_space<vmem>>, vector<8x128xf32>,
    return
  }
  func.func @transform_0(%arg0: i32) -> (i32, i32) {
    %c0_i32 = arith.constant 0 : i32
    %c0_i32_0 = arith.constant 0 : i32
    return %arg0, %c0_i32 : i32, i32
  }
  func.func @transform_1(%arg0: i32) -> (i32, i32) {
    %c0_i32 = arith.constant 0 : i32
    %c0_i32_0 = arith.constant 0 : i32
    %c0_i32_1 = arith.constant 0 : i32
    return %c0_i32, %c0_i32_0 : i32, i32
  }
  func.func @transform_2(%arg0: i32) -> (i32, i32) {
    %c0_i32 = arith.constant 0 : i32
    %c0_i32_0 = arith.constant 0 : i32
    %c0_i32_1 = arith.constant 0 : i32
    return %c0_i32, %c0_i32_0 : i32, i32
  }
  func.func @transform_3(%arg0: i32) -> (i32, i32) {
    %c0_i32 = arith.constant 0 : i32
    %c0_i32_0 = arith.constant 0 : i32
    return %arg0, %c0_i32 : i32, i32
  }
}

</mosaic_0001>

<bundles_post_ra>
// kernel: tpu_custom_call.1
= control target key start
LH: loop header
LB: loop body
LE: loop exit
PB: predicated region body
PF: predicated region fallthrough
CT: control target
= control target key end

     0   :  { %8 = vsyncpa [#allocation3], 0  ;;  %s1633_s0 = inlined_call_operand.hbm [shape: f32[8,256], index: 0, kind: input, shape index: {}]   ;;  %s1634_s1 = inlined_call_operand.hbm [shape: bf16[128,1152], index: 1, kind: input, shape index: {}]   ;;  %s1635_s2 = inlined_call_operand.hbm [shape: f32[1,1152], index: 2, kind: input, shape index: {}]   ;;  %s1636_s3 = inlined_call_operand.hbm [shape: f32[8,384], index: 3, kind: output, shape index: {}]  }
   0x1   :  { %9 = vsyncpa [#allocation6], 0 }
   0x2   :  { %10 = vsyncpa [#allocation4], 0  ;;  %s1486_s12 = smov [#allocation5]   ;;  %s1392_s16 = scalar_lea.hbm %s1634_s1, 9216 }
   0x3   :  { %s26_s13 = sshll.u32 %s1486_s12, 4  ;;  %p1393_p0 = scmp.ne.s32.totalorder %s1634_s1, %s1392_s16  ;;  %s27_s13 = int_to_ptr.vmem [resolvable:$true] %s26_s13 }
   0x4   :  { %p1396_p1 = scmp.lt.u32.totalorder %s1392_s16, %s1634_s1 }
   0x6   :  { %p1398_p2 = pnand %p1396_p1, %p1393_p0 }
   0x8   :  { %1401 = shalt.err (!%p1398_p2)
}
   0x9   :  { %s1402_s21 = scalar_lea.vmem %s27_s13, 9216  ;;  %p1407_p4 = scmp.lt.s32.totalorder %s27_s13, %s27_s13 }
   0xa   :  { %p1403_p3 = scmp.ne.s32.totalorder %s27_s13, %s1402_s21  ;;  %p1408_p5 = scmp.lt.s32.totalorder %s1402_s21, %s1402_s21 }
   0xc   :  { %p1409_p6 = por %p1408_p5, %p1407_p4 }
   0xe   :  { %p1410_p7 = pnand %p1409_p6, %p1403_p3 }
  0x10   :  { %1413 = shalt.err (!%p1410_p7)
}
  0x11   :  { %s1487_s22 = smov 576   ;;  %s1488_s23 = smov 36  }
  0x12   :  { %32 = dma.hbm_to_vmem [thread:$0]  %s1634_s1, 9216, %s27_s13, [#allocation6], %s1487_s22, %s1487_s22, %s1488_s23  }
  0x13   :  { %s1489_s26 = smov [#allocation2]   ;;  %s1490_s28 = smov [#allocation7]  }
  0x14   :  { %s17_s27 = sshll.u32 %s1489_s26, 4  ;;  %s39_s29 = sshll.u32 %s1490_s28, 4  ;;  %s18_s27 = int_to_ptr.vmem [resolvable:$true] %s17_s27  ;;  %s40_s29 = int_to_ptr.vmem [resolvable:$true] %s39_s29 }
  0x15   :  { %s1414_s5 = scalar_lea.hbm %s1633_s0, 256 }
  0x16   :  { %p1415_p8 = scmp.ne.s32.totalorder %s1633_s0, %s1414_s5  ;;  %p1418_p9 = scmp.lt.u32.totalorder %s1414_s5, %s1633_s0 }
  0x18   :  { %p1420_p10 = pnand %p1418_p9, %p1415_p8 }
  0x1a   :  { %1423 = shalt.err (!%p1420_p10)
}
  0x1b   :  { %s1424_s1 = scalar_lea.vmem %s18_s27, 256  ;;  %p1429_p12 = scmp.lt.s32.totalorder %s18_s27, %s18_s27 }
  0x1c   :  { %p1425_p11 = scmp.ne.s32.totalorder %s18_s27, %s1424_s1  ;;  %p1430_p13 = scmp.lt.s32.totalorder %s1424_s1, %s1424_s1 }
  0x1e   :  { %p1431_p0 = por %p1430_p13, %p1429_p12 }
  0x20   :  { %p1432_p1 = pnand %p1431_p0, %p1425_p11 }
  0x22   :  { %1435 = shalt.err (!%p1432_p1)
}
  0x23   :  { %20 = dma.hbm_to_vmem [thread:$0]  %s1633_s0, 256, %s18_s27, [#allocation3]  }
  0x24   :  { %s1436_s14 = scalar_lea.hbm %s1635_s2, 144 }
  0x25   :  { %p1437_p2 = scmp.ne.s32.totalorder %s1635_s2, %s1436_s14  ;;  %p1440_p3 = scmp.lt.u32.totalorder %s1436_s14, %s1635_s2 }
  0x27   :  { %p1442_p4 = pnand %p1440_p3, %p1437_p2 }
  0x29   :  { %1445 = shalt.err (!%p1442_p4)
}
  0x2a   :  { %s1446_s19 = scalar_lea.vmem %s40_s29, 144  ;;  %s1450_s20 = scalar_lea.vmem %s40_s29, 160 }
  0x2b   :  { %p1447_p5 = scmp.ne.s32.totalorder %s40_s29, %s1446_s19  ;;  %p1451_p6 = scmp.lt.s32.totalorder %s40_s29, %s40_s29 }
  0x2c   :  { %p1452_p7 = scmp.lt.s32.totalorder %s1450_s20, %s1446_s19 }
  0x2e   :  { %p1453_p8 = por %p1452_p7, %p1451_p6 }
  0x30   :  { %p1454_p9 = pnand %p1453_p8, %p1447_p5 }
  0x32   :  { %1457 = shalt.err (!%p1454_p9)
}
  0x33   :  { %42 = dma.hbm_to_vmem [thread:$0]  %s1635_s2, 144, %s40_s29, [#allocation6]  }
  0x34   :  { %1480 = dma.done.wait [#allocation3], 256  }
  0x35   :  { %1481 = vsyncadd [#allocation3], 4294967040 }
  0x36   :  { %1482 = dma.done.wait [#allocation6], 9360  }
  0x37   :  { %1483 = vsyncadd [#allocation6], 4294957936  ;;  %v1491_v0 = vmov 0.0   ;;  %vm1492_vm0 = vmmov 0   ;;  %v1310_v1 = vld [vmem:[#allocation5] ss:$36 sps:$4 sm:$0xff]  }
  0x38   :  { %1161 = vmatprep.subr.bf16.mxu0 %v1491_v0  ;;  %1177 = vmatprep.mubr.msk.bf16.mxu0 %vm1492_vm0, %v1491_v0  ;;  %v1311_v2 = vld [vmem:[#allocation5 + $0x48] ss:$36 sps:$4 sm:$0xff]   ;;  %v1312_v3 = vld [vmem:[#allocation5 + $0x90] ss:$36 sps:$4 sm:$0xff]   ;;  %v1313_v5 = vld [vmem:[#allocation5 + $0xd8] ss:$36 sps:$4 sm:$0xff]  }
  0x39   :  { %1181 = vmatprep.subr.bf16.mxu1 %v1491_v0  ;;  %1197 = vmatprep.mubr.msk.bf16.mxu1 %vm1492_vm0, %v1491_v0  ;;  %v1318_v4 = vld [vmem:[#allocation5 + $0x4] ss:$36 sps:$4 sm:$0xff]   ;;  %v1319_v6 = vld [vmem:[#allocation5 + $0x4c] ss:$36 sps:$4 sm:$0xff]   ;;  %v1320_v8 = vld [vmem:[#allocation5 + $0x94] ss:$36 sps:$4 sm:$0xff]  }
  0x3a   :  { %1162 = vmatpush3.bf16.msra.mxu0 %v1310_v1  ;;  %1182 = vmatpush3.bf16.msra.mxu1 %v1318_v4  ;;  %v1314_v7 = vld [vmem:[#allocation5 + $0x120] ss:$36 sps:$4 sm:$0xff]   ;;  %v1315_v9 = vld [vmem:[#allocation5 + $0x168] ss:$36 sps:$4 sm:$0xff]   ;;  %v1316_v11 = vld [vmem:[#allocation5 + $0x1b0] ss:$36 sps:$4 sm:$0xff]  }
  0x3b   :  { %1163 = vmatprep.subr.bf16.mxu0 %v1491_v0  ;;  %1183 = vmatprep.subr.bf16.mxu1 %v1491_v0  ;;  %v1321_v10 = vld [vmem:[#allocation5 + $0xdc] ss:$36 sps:$4 sm:$0xff]   ;;  %v1322_v12 = vld [vmem:[#allocation5 + $0x124] ss:$36 sps:$4 sm:$0xff]   ;;  %v53_v14 = vld [vmem:[#allocation2] sm:$0xff]  ;;  %v1493_v59 = vmov 0  }
  0x3c   :  { %v1317_v13 = vld [vmem:[#allocation5 + $0x1f8] ss:$36 sps:$4 sm:$0xff]   ;;  %v1323_v15 = vld [vmem:[#allocation5 + $0x16c] ss:$36 sps:$4 sm:$0xff]   ;;  %v71_v16 = vpack.c.bf16 %v53_v14, %v53_v14  ;;  %v1329_v22 = vld [vmem:[#allocation5 + $0xe0] ss:$36 sps:$4 sm:$0xff]  }
  0x3d   :  { %v1324_v17 = vld [vmem:[#allocation5 + $0x1b4] ss:$36 sps:$4 sm:$0xff]   ;;  %v1325_v18 = vld [vmem:[#allocation5 + $0x1fc] ss:$36 sps:$4 sm:$0xff]   ;;  %v1326_v19 = vld [vmem:[#allocation5 + $0x8] ss:$36 sps:$4 sm:$0xff]  }
  0x3e   :  { %1164 = vmatpush3.bf16.msra.mxu0 %v1311_v2  ;;  %1184 = vmatpush3.bf16.msra.mxu1 %v1319_v6  ;;  %v1327_v20 = vld [vmem:[#allocation5 + $0x50] ss:$36 sps:$4 sm:$0xff]   ;;  %v1328_v21 = vld [vmem:[#allocation5 + $0x98] ss:$36 sps:$4 sm:$0xff]   ;;  %v1330_v23 = vld [vmem:[#allocation5 + $0x128] ss:$36 sps:$4 sm:$0xff]  }
  0x3f   :  { %1165 = vmatprep.subr.bf16.mxu0 %v1491_v0  ;;  %1185 = vmatprep.subr.bf16.mxu1 %v1491_v0  ;;  %v1331_v24 = vld [vmem:[#allocation5 + $0x170] ss:$36 sps:$4 sm:$0xff]   ;;  %v1019_v25 = vld [vmem:[#allocation7] ss:$0 sm:$0xff]  ;;  %v1332_v33 = vld [vmem:[#allocation5 + $0x1b8] ss:$36 sps:$4 sm:$0xff]  }
  0x40   :  { %v1333_v34 = vld [vmem:[#allocation5 + $0x200] ss:$36 sps:$4 sm:$0xff]   ;;  %v1334_v35 = vld [vmem:[#allocation5 + $0xc] ss:$36 sps:$4 sm:$0xff]   ;;  %v1339_v37 = vld [vmem:[#allocation5 + $0x58] ss:$36 sps:$4 sm:$0xff]  }
  0x41   :  { %v1336_v36 = vld [vmem:[#allocation5 + $0x10] ss:$36 sps:$4 sm:$0xff]   ;;  %v1342_v39 = vld [vmem:[#allocation5 + $0xa0] ss:$36 sps:$4 sm:$0xff]   ;;  %v1345_v41 = vld [vmem:[#allocation5 + $0xe8] ss:$36 sps:$4 sm:$0xff]  }
  0x42   :  { %1166 = vmatpush3.bf16.msra.mxu0 %v1312_v3  ;;  %1186 = vmatpush3.bf16.msra.mxu1 %v1320_v8  ;;  %v1337_v38 = vld [vmem:[#allocation5 + $0x54] ss:$36 sps:$4 sm:$0xff]   ;;  %v1340_v40 = vld [vmem:[#allocation5 + $0x9c] ss:$36 sps:$4 sm:$0xff]   ;;  %v1343_v42 = vld [vmem:[#allocation5 + $0xe4] ss:$36 sps:$4 sm:$0xff]  }
  0x43   :  { %1167 = vmatprep.subr.bf16.mxu0 %v1491_v0  ;;  %1187 = vmatprep.subr.bf16.mxu1 %v1491_v0  ;;  %v1348_v43 = vld [vmem:[#allocation5 + $0x130] ss:$36 sps:$4 sm:$0xff]   ;;  %v1351_v45 = vld [vmem:[#allocation5 + $0x178] ss:$36 sps:$4 sm:$0xff]   ;;  %v1354_v47 = vld [vmem:[#allocation5 + $0x1c0] ss:$36 sps:$4 sm:$0xff]  }
  0x44   :  { %v1346_v44 = vld [vmem:[#allocation5 + $0x12c] ss:$36 sps:$4 sm:$0xff]   ;;  %v1349_v46 = vld [vmem:[#allocation5 + $0x174] ss:$36 sps:$4 sm:$0xff]   ;;  %v1352_v48 = vld [vmem:[#allocation5 + $0x1bc] ss:$36 sps:$4 sm:$0xff]  }
  0x45   :  { %v1028_v49 = vld [vmem:[#allocation7 + $0x1] ss:$0 sm:$0xff]  ;;  %v1357_v57 = vld [vmem:[#allocation5 + $0x208] ss:$36 sps:$4 sm:$0xff]   ;;  %v1358_v60 = vld [vmem:[#allocation5 + $0x14] ss:$36 sps:$4 sm:$0xff]  }
  0x46   :  { %1168 = vmatpush3.bf16.msra.mxu0 %v1313_v5  ;;  %1188 = vmatpush3.bf16.msra.mxu1 %v1321_v10  ;;  %v1355_v58 = vld [vmem:[#allocation5 + $0x204] ss:$36 sps:$4 sm:$0xff]   ;;  %v1359_v61 = vld [vmem:[#allocation5 + $0x5c] ss:$36 sps:$4 sm:$0xff]   ;;  %v1361_v8 = vld [vmem:[#allocation5 + $0xec] ss:$36 sps:$4 sm:$0xff]  }
  0x47   :  { %1169 = vmatprep.subr.bf16.mxu0 %v1491_v0  ;;  %1189 = vmatprep.subr.bf16.mxu1 %v1491_v0  ;;  %v1037_v62 = vld [vmem:[#allocation7 + $0x2] ss:$0 sm:$0xff]  ;;  %s1494_s2 = smov [#allocation8]  }
  0x48   :  { %v1363_v10 = vld [vmem:[#allocation5 + $0x17c] ss:$36 sps:$4 sm:$0xff]   ;;  %s1009_s22 = sshll.u32 %s1494_s2, 4  ;;  %s1010_s22 = int_to_ptr.vmem [resolvable:$true] %s1009_s22 }
  0x49   :  { %v1367_v14 = vld [vmem:[#allocation5 + $0x60] ss:$36 sps:$4 sm:$0xff]   ;;  %s1458_s23 = scalar_lea.vmem %s1010_s22, 384  ;;  %p1463_p11 = scmp.lt.s32.totalorder %s1010_s22, %s1010_s22 }
  0x4a   :  { %1170 = vmatpush3.bf16.msra.mxu0 %v1314_v7  ;;  %1190 = vmatpush3.bf16.msra.mxu1 %v1322_v12  ;;  %v1360_v7 = vld [vmem:[#allocation5 + $0xa4] ss:$36 sps:$4 sm:$0xff]   ;;  %v1365_v12 = vld [vmem:[#allocation5 + $0x20c] ss:$36 sps:$4 sm:$0xff]   ;;  %p1459_p10 = scmp.ne.s32.totalorder %s1010_s22, %s1458_s23  ;;  %p1464_p12 = scmp.lt.s32.totalorder %s1458_s23, %s1458_s23 }
  0x4b   :  { %1171 = vmatprep.subr.bf16.mxu0 %v1491_v0  ;;  %1191 = vmatprep.subr.bf16.mxu1 %v1491_v0 }
  0x4c   :  { %p1465_p13 = por %p1464_p12, %p1463_p11 }
  0x4e   :  { %1172 = vmatpush3.bf16.msra.mxu0 %v1315_v9  ;;  %1192 = vmatpush3.bf16.msra.mxu1 %v1323_v15  ;;  %v1362_v9 = vld [vmem:[#allocation5 + $0x134] ss:$36 sps:$4 sm:$0xff]   ;;  %v1368_v15 = vld [vmem:[#allocation5 + $0xa8] ss:$36 sps:$4 sm:$0xff]   ;;  %p1466_p0 = pnand %p1465_p13, %p1459_p10 }
  0x4f   :  { %1173 = vmatprep.subr.bf16.mxu0 %v1491_v0  ;;  %1193 = vmatprep.subr.bf16.mxu1 %v1491_v0 }
  0x52   :  { %1174 = vmatpush3.bf16.msra.mxu0 %v1316_v11  ;;  %1194 = vmatpush3.bf16.msra.mxu1 %v1324_v17  ;;  %v1364_v11 = vld [vmem:[#allocation5 + $0x1c4] ss:$36 sps:$4 sm:$0xff]   ;;  %v1370_v17 = vld [vmem:[#allocation5 + $0x138] ss:$36 sps:$4 sm:$0xff]  }
  0x53   :  { %1175 = vmatprep.subr.bf16.mxu0 %v1491_v0  ;;  %1195 = vmatprep.subr.bf16.mxu1 %v1491_v0 }
  0x56   :  { %1176 = vmatpush3.bf16.msra.mxu0 %v1317_v13  ;;  %1196 = vmatpush3.bf16.msra.mxu1 %v1325_v18  ;;  %v1366_v13 = vld [vmem:[#allocation5 + $0x18] ss:$36 sps:$4 sm:$0xff]   ;;  %v1371_v18 = vld [vmem:[#allocation5 + $0x180] ss:$36 sps:$4 sm:$0xff]  }
  0x57   :  { %1201 = vmatprep.subr.bf16.mxu0 %v1491_v0  ;;  %502 = vmatprep.subr.bf16.mxu1 %v1336_v36 }
  0x59   :  { %1178 = vmatmul.mubr.bf16.vlgmr.msra.gmra.mrb[0].mxu0 %v71_v16  ;;  %v1369_v16 = vld [vmem:[#allocation5 + $0xf0] ss:$36 sps:$4 sm:$0xff]  }
  0x5a   :  { %1217 = vmatprep.mubr.msk.bf16.mxu0 %vm1492_vm0, %v1491_v0  ;;  %1202 = vmatpush3.bf16.msra.mxu0 %v1326_v19  ;;  %v412_v19 = vlaneseq }
  0x5b   :  { %1203 = vmatprep.subr.bf16.mxu0 %v1491_v0 }
  0x5e   :  { %1204 = vmatpush3.bf16.msra.mxu0 %v1327_v20  ;;  %v413_v20 = vshrl.u32 %v412_v19, 7 }
  0x5f   :  { %1205 = vmatprep.subr.bf16.mxu0 %v1491_v0 }
  0x62   :  { %1206 = vmatpush3.bf16.msra.mxu0 %v1328_v21  ;;  %v414_v21 = vsub.s32 0, %v413_v20 }
  0x63   :  { %1207 = vmatprep.subr.bf16.mxu0 %v1491_v0 }
  0x66   :  { %1208 = vmatpush3.bf16.msra.mxu0 %v1329_v22  ;;  %v409_v22 = vld [vmem:[#allocation7 + $0x3] sm:$0x3] }
  0x67   :  { %1209 = vmatprep.subr.bf16.mxu0 %v1491_v0 }
  0x6a   :  { %1210 = vmatpush3.bf16.msra.mxu0 %v1330_v23  ;;  %v418_v23 = vsub.s32 1, %v413_v20 }
  0x6b   :  { %1211 = vmatprep.subr.bf16.mxu0 %v1491_v0 }
  0x6e   :  { %1212 = vmatpush3.bf16.msra.mxu0 %v1331_v24  ;;  %v415_v24 = vrot.slane %v409_v22, %v414_v21 }
  0x6f   :  { %1213 = vmatprep.subr.bf16.mxu0 %v1491_v0 }
  0x72   :  { %1214 = vmatpush3.bf16.msra.mxu0 %v1332_v33 }
  0x73   :  { %1215 = vmatprep.subr.bf16.mxu0 %v1491_v0 }
  0x76   :  { %1216 = vmatpush3.bf16.msra.mxu0 %v1333_v34  ;;  %v545_v34 = vld [vmem:[#allocation2 + $0x8] sm:$0xff] }
  0x77   :  { %1221 = vmatprep.subr.bf16.mxu0 %v1491_v0 }
 0x12c   :  { %v160_v26 = vpop.f32.mrb[0].mxu0 }
 0x12d   :  { %v161_v27 = vadd.f32 %v1019_v25, %v160_v26  ;;  %v1179_v28 = vpop.f32.mrb[1].mxu0  ;;  %v419_v25 = vrot.slane %v409_v22, %v418_v23 }
 0x12e   :  { %v163_v29 = vpop.f32.mrb[2].mxu0 }
 0x12f   :  { %v166_v30 = vmax.f32 %v161_v27, 0.0  ;;  %v1180_v31 = vpop.f32.mrb[3].mxu0 }
 0x131   :  { %v184_v32 = vpack.c.bf16 %v166_v30, %v166_v30 }
 0x133   :  { %1198 = vmatmul.mubr.bf16.vlgmr.msra.gmra.mrb[0].mxu1 %v184_v32 }
 0x134   :  { %503 = vmatpush1.bf16.msra.mxu1 %v1334_v35  ;;  %534 = vmatprep.mubr.bf16.mxu1 %v1493_v59  ;;  %v1384_v59 = vld [vmem:[#allocation5 + $0xb0] ss:$36 sps:$4 sm:$0xff]  }
 0x135   :  { %504 = vmatprep.subr.bf16.mxu1 %v1339_v37 }
 0x138   :  { %505 = vmatpush1.bf16.msra.mxu1 %v1337_v38 }
 0x139   :  { %506 = vmatprep.subr.bf16.mxu1 %v1342_v39  ;;  %v1372_v39 = vld [vmem:[#allocation5 + $0x1c8] ss:$36 sps:$4 sm:$0xff]  }
 0x13c   :  { %507 = vmatpush1.bf16.msra.mxu1 %v1340_v40  ;;  %v1373_v40 = vld [vmem:[#allocation5 + $0x210] ss:$36 sps:$4 sm:$0xff]  }
 0x13d   :  { %508 = vmatprep.subr.bf16.mxu1 %v1345_v41  ;;  %v1374_v41 = vld [vmem:[#allocation5 + $0x1c] ss:$36 sps:$4 sm:$0xff]  }
 0x140   :  { %509 = vmatpush1.bf16.msra.mxu1 %v1343_v42  ;;  %v1375_v42 = vld [vmem:[#allocation5 + $0x64] ss:$36 sps:$4 sm:$0xff]  }
 0x141   :  { %510 = vmatprep.subr.bf16.mxu1 %v1348_v43  ;;  %v1376_v43 = vld [vmem:[#allocation5 + $0xac] ss:$36 sps:$4 sm:$0xff]  }
 0x144   :  { %511 = vmatpush1.bf16.msra.mxu1 %v1346_v44  ;;  %v1377_v44 = vld [vmem:[#allocation5 + $0xf4] ss:$36 sps:$4 sm:$0xff]  }
 0x145   :  { %512 = vmatprep.subr.bf16.mxu1 %v1351_v45  ;;  %v1378_v45 = vld [vmem:[#allocation5 + $0x13c] ss:$36 sps:$4 sm:$0xff]  }
 0x148   :  { %513 = vmatpush1.bf16.msra.mxu1 %v1349_v46  ;;  %v1379_v46 = vld [vmem:[#allocation5 + $0x184] ss:$36 sps:$4 sm:$0xff]  }
 0x149   :  { %514 = vmatprep.subr.bf16.mxu1 %v1354_v47  ;;  %v1062_v47 = vld [vmem:[#allocation7 + $0x5] ss:$0 sm:$0xff] }
 0x14c   :  { %515 = vmatpush1.bf16.msra.mxu1 %v1352_v48 }
 0x14d   :  { %516 = vmatprep.subr.bf16.mxu1 %v1357_v57  ;;  %v1382_v57 = vld [vmem:[#allocation5 + $0x20] ss:$36 sps:$4 sm:$0xff]  }
 0x150   :  { %517 = vmatpush1.bf16.msra.mxu1 %v1355_v58  ;;  %v1383_v58 = vld [vmem:[#allocation5 + $0x68] ss:$36 sps:$4 sm:$0xff]  }
 0x151   :  { %1241 = vmatprep.subr.bf16.mxu1 %v1491_v0 }
 0x206   :  { %v273_v50 = vpop.f32.mrb[0].mxu1 }
 0x207   :  { %v274_v51 = vadd.f32 %v1028_v49, %v273_v50  ;;  %v1199_v52 = vpop.f32.mrb[1].mxu1 }
 0x208   :  { %v276_v53 = vpop.f32.mrb[2].mxu1 }
 0x209   :  { %v279_v54 = vmax.f32 %v274_v51, 0.0  ;;  %v1200_v55 = vpop.f32.mrb[3].mxu1 }
 0x20a   :  { %v1380_v55 = vld [vmem:[#allocation5 + $0x1cc] ss:$36 sps:$4 sm:$0xff]  }
 0x20b   :  { %v297_v56 = vpack.c.bf16 %v279_v54, %v279_v54 }
 0x20d   :  { %1218 = vmatmul.mubr.bf16.vlgmr.msra.gmra.mrb[4].mxu0 %v297_v56  ;;  %v1381_v56 = vld [vmem:[#allocation5 + $0x214] ss:$36 sps:$4 sm:$0xff]  }
 0x20e   :  { %1237 = vmatprep.mubr.msk.bf16.mxu0 %vm1492_vm0, %v1491_v0  ;;  %1222 = vmatpush3.bf16.msra.mxu0 %v1358_v60  ;;  %v1385_v60 = vld [vmem:[#allocation5 + $0xf8] ss:$36 sps:$4 sm:$0xff]  }
 0x20f   :  { %1223 = vmatprep.subr.bf16.mxu0 %v1491_v0 }
 0x212   :  { %1224 = vmatpush3.bf16.msra.mxu0 %v1359_v61  ;;  %v1386_v61 = vld [vmem:[#allocation5 + $0x140] ss:$36 sps:$4 sm:$0xff]  }
 0x213   :  { %1225 = vmatprep.subr.bf16.mxu0 %v1491_v0 }
 0x216   :  { %1226 = vmatpush3.bf16.msra.mxu0 %v1360_v7 }
 0x217   :  { %1227 = vmatprep.subr.bf16.mxu0 %v1491_v0 }
 0x21a   :  { %1228 = vmatpush3.bf16.msra.mxu0 %v1361_v8  ;;  %v1388_v8 = vld [vmem:[#allocation5 + $0x1d0] ss:$36 sps:$4 sm:$0xff]  }
 0x21b   :  { %1229 = vmatprep.subr.bf16.mxu0 %v1491_v0 }
 0x21e   :  { %1230 = vmatpush3.bf16.msra.mxu0 %v1362_v9  ;;  %v1389_v9 = vld [vmem:[#allocation5 + $0x218] ss:$36 sps:$4 sm:$0xff]  }
 0x21f   :  { %1231 = vmatprep.subr.bf16.mxu0 %v1491_v0 }
 0x222   :  { %1232 = vmatpush3.bf16.msra.mxu0 %v1363_v10  ;;  %v1080_v10 = vld [vmem:[#allocation7 + $0x7] ss:$0 sm:$0xff] }
 0x223   :  { %1233 = vmatprep.subr.bf16.mxu0 %v1491_v0 }
 0x226   :  { %1234 = vmatpush3.bf16.msra.mxu0 %v1364_v11 }
 0x227   :  { %1235 = vmatprep.subr.bf16.mxu0 %v1491_v0 }
 0x22a   :  { %1236 = vmatpush3.bf16.msra.mxu0 %v1365_v12 }
 0x22b   :  { %1261 = vmatprep.subr.bf16.mxu0 %v1491_v0 }
 0x2e0   :  { %v386_v63 = vpop.f32.mrb[4].mxu0 }
 0x2e1   :  { %v387_v1 = vadd.f32 %v1037_v62, %v386_v63  ;;  %v1219_v2 = vpop.f32.mrb[5].mxu0  ;;  %v1387_v62 = vld [vmem:[#allocation5 + $0x188] ss:$36 sps:$4 sm:$0xff]   ;;  %v1071_v63 = vld [vmem:[#allocation7 + $0x6] ss:$0 sm:$0xff] }
 0x2e2   :  { %v389_v3 = vpop.f32.mrb[6].mxu0 }
 0x2e3   :  { %v392_v4 = vmax.f32 %v387_v1, 0.0  ;;  %v1220_v5 = vpop.f32.mrb[7].mxu0 }
 0x2e5   :  { %v410_v6 = vpack.c.bf16 %v392_v4, %v392_v4 }
 0x2e7   :  { %535 = vmatmul.mubr.bf16.vlgmr.msra.gmra.mrb[4].mxu1 %v410_v6 }
 0x2e8   :  { %1257 = vmatprep.mubr.msk.bf16.mxu1 %vm1492_vm0, %v1491_v0  ;;  %1242 = vmatpush3.bf16.msra.mxu1 %v1366_v13 }
 0x2e9   :  { %1243 = vmatprep.subr.bf16.mxu1 %v1491_v0 }
 0x2ec   :  { %1244 = vmatpush3.bf16.msra.mxu1 %v1367_v14 }
 0x2ed   :  { %1245 = vmatprep.subr.bf16.mxu1 %v1491_v0 }
 0x2f0   :  { %1246 = vmatpush3.bf16.msra.mxu1 %v1368_v15 }
 0x2f1   :  { %1247 = vmatprep.subr.bf16.mxu1 %v1491_v0 }
 0x2f4   :  { %1248 = vmatpush3.bf16.msra.mxu1 %v1369_v16 }
 0x2f5   :  { %1249 = vmatprep.subr.bf16.mxu1 %v1491_v0 }
 0x2f8   :  { %1250 = vmatpush3.bf16.msra.mxu1 %v1370_v17 }
 0x2f9   :  { %1251 = vmatprep.subr.bf16.mxu1 %v1491_v0 }
 0x2fc   :  { %1252 = vmatpush3.bf16.msra.mxu1 %v1371_v18  ;;  %v1089_v18 = vld [vmem:[#allocation7 + $0x8] ss:$0 sm:$0xff] }
 0x2fd   :  { %1253 = vmatprep.subr.bf16.mxu1 %v1491_v0 }
 0x300   :  { %1254 = vmatpush3.bf16.msra.mxu1 %v1372_v39 }
 0x301   :  { %1255 = vmatprep.subr.bf16.mxu1 %v1491_v0 }
 0x304   :  { %1256 = vmatpush3.bf16.msra.mxu1 %v1373_v40 }
 0x305   :  { %1281 = vmatprep.subr.bf16.mxu1 %v1491_v0 }
 0x3ba   :  { %v536_v26 = vpop.f32.mrb[4].mxu1 }
 0x3bb   :  { %v537_v27 = vadd.f32 %v536_v26, %v415_v24  ;;  %v538_v28 = vpop.f32.mrb[5].mxu1 }
 0x3bc   :  { %v539_v29 = vadd.f32 %v538_v28, %v419_v25  ;;  %v540_v30 = vpop.f32.mrb[6].mxu1 }
 0x3bd   :  { %543 = vst [vmem:[#allocation8 + $0x8] sm:$0xff] %v537_v27  ;;  %v541_v31 = vpop.f32.mrb[7].mxu1 }
 0x3be   :  { %544 = vst [vmem:[#allocation8 + $0x10] sm:$0xff] %v539_v29  ;;  %v546_v32 = vmul.f32 0.5, %v539_v29 }
 0x3c0   :  { %v547_v33 = vmul.f32 1.442695, %v546_v32 }
 0x3c2   :  { %1390 = vpow2.f32 %v547_v33 }
 0x3cc   :  { %v1391_v35 = vpop.eup %1390 }
 0x3cd   :  { %v549_v36 = vmul.f32 %v1391_v35, %v545_v34 }
 0x3cf   :  { %v550_v37 = vadd.f32 %v549_v36, %v537_v27 }
 0x3d1   :  { %v568_v38 = vpack.c.bf16 %v550_v37, %v550_v37 }
 0x3d3   :  { %1238 = vmatmul.mubr.bf16.vlgmr.msra.gmra.mrb[8].mxu0 %v568_v38 }
 0x3d4   :  { %1277 = vmatprep.mubr.msk.bf16.mxu0 %vm1492_vm0, %v1491_v0  ;;  %1262 = vmatpush3.bf16.msra.mxu0 %v1374_v41 }
 0x3d5   :  { %1263 = vmatprep.subr.bf16.mxu0 %v1491_v0 }
 0x3d8   :  { %1264 = vmatpush3.bf16.msra.mxu0 %v1375_v42 }
 0x3d9   :  { %1265 = vmatprep.subr.bf16.mxu0 %v1491_v0 }
 0x3dc   :  { %1266 = vmatpush3.bf16.msra.mxu0 %v1376_v43 }
 0x3dd   :  { %1267 = vmatprep.subr.bf16.mxu0 %v1491_v0 }
 0x3e0   :  { %1268 = vmatpush3.bf16.msra.mxu0 %v1377_v44 }
 0x3e1   :  { %1269 = vmatprep.subr.bf16.mxu0 %v1491_v0 }
 0x3e4   :  { %1270 = vmatpush3.bf16.msra.mxu0 %v1378_v45 }
 0x3e5   :  { %1271 = vmatprep.subr.bf16.mxu0 %v1491_v0 }
 0x3e8   :  { %1272 = vmatpush3.bf16.msra.mxu0 %v1379_v46 }
 0x3e9   :  { %1273 = vmatprep.subr.bf16.mxu0 %v1491_v0 }
 0x3ec   :  { %1274 = vmatpush3.bf16.msra.mxu0 %v1380_v55 }
 0x3ed   :  { %1275 = vmatprep.subr.bf16.mxu0 %v1491_v0 }
 0x3f0   :  { %1276 = vmatpush3.bf16.msra.mxu0 %v1381_v56 }
 0x4a6   :  { %v657_v48 = vpop.f32.mrb[8].mxu0 }
 0x4a7   :  { %v658_v49 = vadd.f32 %v1062_v47, %v657_v48  ;;  %v1239_v50 = vpop.f32.mrb[9].mxu0 }
 0x4a8   :  { %v660_v51 = vpop.f32.mrb[10].mxu0 }
 0x4a9   :  { %v663_v52 = vmax.f32 %v658_v49, 0.0  ;;  %v1240_v53 = vpop.f32.mrb[11].mxu0 }
 0x4ab   :  { %v681_v54 = vpack.c.bf16 %v663_v52, %v663_v52 }
 0x4ad   :  { %1258 = vmatmul.mubr.bf16.vlgmr.msra.gmra.mrb[8].mxu1 %v681_v54 }
 0x4ae   :  { %1297 = vmatprep.mubr.msk.bf16.mxu1 %vm1492_vm0, %v1491_v0  ;;  %1282 = vmatpush3.bf16.msra.mxu1 %v1382_v57 }
 0x4af   :  { %1283 = vmatprep.subr.bf16.mxu1 %v1491_v0 }
 0x4b2   :  { %1284 = vmatpush3.bf16.msra.mxu1 %v1383_v58 }
 0x4b3   :  { %1285 = vmatprep.subr.bf16.mxu1 %v1491_v0 }
 0x4b6   :  { %1286 = vmatpush3.bf16.msra.mxu1 %v1384_v59 }
 0x4b7   :  { %1287 = vmatprep.subr.bf16.mxu1 %v1491_v0 }
 0x4ba   :  { %1288 = vmatpush3.bf16.msra.mxu1 %v1385_v60 }
 0x4bb   :  { %1289 = vmatprep.subr.bf16.mxu1 %v1491_v0 }
 0x4be   :  { %1290 = vmatpush3.bf16.msra.mxu1 %v1386_v61 }
 0x4bf   :  { %1291 = vmatprep.subr.bf16.mxu1 %v1491_v0 }
 0x4c2   :  { %1292 = vmatpush3.bf16.msra.mxu1 %v1387_v62 }
 0x4c3   :  { %1293 = vmatprep.subr.bf16.mxu1 %v1491_v0 }
 0x4c6   :  { %1294 = vmatpush3.bf16.msra.mxu1 %v1388_v8 }
 0x4c7   :  { %1295 = vmatprep.subr.bf16.mxu1 %v1491_v0 }
 0x4ca   :  { %1296 = vmatpush3.bf16.msra.mxu1 %v1389_v9 }
 0x580   :  { %v770_v1 = vpop.f32.mrb[8].mxu1 }
 0x581   :  { %v771_v2 = vadd.f32 %v1071_v63, %v770_v1  ;;  %v1259_v3 = vpop.f32.mrb[9].mxu1 }
 0x582   :  { %v773_v4 = vpop.f32.mrb[10].mxu1 }
 0x583   :  { %v776_v5 = vmax.f32 %v771_v2, 0.0  ;;  %v1260_v6 = vpop.f32.mrb[11].mxu1 }
 0x585   :  { %v794_v7 = vpack.c.bf16 %v776_v5, %v776_v5 }
 0x587   :  { %1278 = vmatmul.mubr.bf16.vlgmr.msra.gmra.mrb[12].mxu0 %v794_v7 }
 0x65a   :  { %v883_v11 = vpop.f32.mrb[12].mxu0 }
 0x65b   :  { %v884_v12 = vadd.f32 %v1080_v10, %v883_v11  ;;  %v1279_v13 = vpop.f32.mrb[13].mxu0 }
 0x65c   :  { %v886_v14 = vpop.f32.mrb[14].mxu0 }
 0x65d   :  { %v889_v15 = vmax.f32 %v884_v12, 0.0  ;;  %v1280_v16 = vpop.f32.mrb[15].mxu0 }
 0x65f   :  { %v907_v17 = vpack.c.bf16 %v889_v15, %v889_v15 }
 0x661   :  { %1298 = vmatmul.mubr.bf16.vlgmr.msra.gmra.mrb[12].mxu1 %v907_v17 }
 0x734   :  { %v996_v19 = vpop.f32.mrb[12].mxu1 }
 0x735   :  { %v997_v20 = vadd.f32 %v1089_v18, %v996_v19  ;;  %v1299_v21 = vpop.f32.mrb[13].mxu1 }
 0x736   :  { %v999_v22 = vpop.f32.mrb[14].mxu1 }
 0x737   :  { %1002 = vst [vmem:[#allocation8] sm:$0xff] %v997_v20  ;;  %v1300_v0 = vpop.f32.mrb[15].mxu1 }
 0x738   :  { %1469 = shalt.err (!%p1466_p0)
}
 0x739   :  { %s1470_s26 = scalar_lea.hbm %s1636_s3, 384 }
 0x73a   :  { %p1471_p1 = scmp.ne.s32.totalorder %s1636_s3, %s1470_s26  ;;  %p1474_p2 = scmp.lt.u32.totalorder %s1470_s26, %s1636_s3 }
 0x73c   :  { %p1476_p3 = pnand %p1474_p2, %p1471_p1 }
 0x73e   :  { %1479 = shalt.err (!%p1476_p3)
}
 0x73f   :  { %1012 = dma.vmem_to_hbm [thread:$0]  %s1010_s22, 384, %s1636_s3, [#allocation4]  }
 0x740   :  { %1484 = dma.done.wait [#allocation4], 384  }
 0x741   :  { %1485 = vsyncadd [#allocation4], 4294966912 }
 0x742   :  { %1016 = vsyncpa [#allocation3], 1 }
 0x743   :  { %1017 = vsyncpa [#allocation6], 1 }
 0x744   :  { %1018 = vsyncpa [#allocation4], 1 }

</bundles_post_ra>
